<compile_context>
chip_gen: v7x
topology: tpu7x:2x2x1
jax: 0.10.0
libtpu: 0.0.40
codegen_flags: <defaults>
</compile_context>

<pallas_src>
import numpy as np
import jax
import jax.numpy as jnp
from jax import lax
from jax.experimental import pallas as pl
from jax.experimental.pallas import tpu as pltpu


def _spectral_conv1d_kernel(x_ref, f2t_ref, w1_ref, w2_ref, w3_ref,
                            gr_ref, gi_ref, o_ref):
    TB, Ci, N = x_ref.shape
    Mp = f2t_ref.shape[0] // 2
    Co = w1_ref.shape[2]
    Np = o_ref.shape[2]

    # ---- stage 1: truncated rfft, produced mode-major (no in-kernel transpose) ----
    # (2Mp, N) x (TB*Ci, N) contracted over N -> (2Mp, TB*Ci); modes sit on sublanes.
    x2 = x_ref[...].reshape(TB * Ci, N)
    Xt = lax.dot_general(f2t_ref[...], x2, (((1,), (1,)), ((), ())),
                         preferred_element_type=jnp.float32)
    # Spectrum-sized relayouts only (Mp is a multiple of 8 -> cheap sublane slices).
    Xr = Xt[:Mp, :].reshape(Mp, TB, Ci)
    Xi = Xt[Mp:, :].reshape(Mp, TB, Ci)

    # ---- stage 2: per-mode complex channel mixing, batched over modes (Karatsuba) ----
    # Y = (Xr + iXi) @ (Wr + iWi) with w1=Wr, w2=Wi-Wr, w3=Wr+Wi:
    #   k1=(Xr+Xi)Wr, k2=Xr(Wi-Wr), k3=Xi(Wr+Wi); Yr=k1-k3, Yi=k1+k2.
    dn2 = (((2,), (1,)), ((0,), (0,)))               # contract Ci, batch over modes
    k1 = lax.dot_general(Xr + Xi, w1_ref[...], dn2, preferred_element_type=jnp.float32)
    k2 = lax.dot_general(Xr, w2_ref[...], dn2, preferred_element_type=jnp.float32)
    k3 = lax.dot_general(Xi, w3_ref[...], dn2, preferred_element_type=jnp.float32)
    Yr = (k1 - k3).reshape(Mp, TB * Co)              # (Mp, TB*Co)
    Yi = (k1 + k2).reshape(Mp, TB * Co)

    # ---- stage 3: inverse rfft — two 2-D dots over the mode axis, lane-dense store ----
    dn3 = (((0,), (0,)), ((), ()))                   # contract modes (sublane axis)
    out = lax.dot_general(Yr, gr_ref[...], dn3, preferred_element_type=jnp.float32)
    out = out + lax.dot_general(Yi, gi_ref[...], dn3, preferred_element_type=jnp.float32)
    o_ref[...] = out.reshape(TB, Co, Np).astype(o_ref.dtype)


def _round_up(v, m):
    return (v + m - 1) // m * m


def _vmem_capacity_bytes():
    try:
        return int(pltpu.get_tpu_info().vmem_capacity_bytes)
    except Exception:
        return 64 * 2**20      # conservative fallback (v7x per-core VMEM)


def _build_bases(N, M, Mp, Np):
    """Transposed forward basis [Fr;Fi] (2Mp, N) and inverse bases Gr/Gi (Mp, Np)."""
    n = np.arange(N, dtype=np.float64)[None, :]
    m = np.arange(M, dtype=np.float64)[:, None]
    ang = 2.0 * np.pi * m * n / N                                # (M, N)
    Frt = np.zeros((Mp, N), np.float64); Frt[:M] = np.cos(ang)
    Fit = np.zeros((Mp, N), np.float64); Fit[:M] = -np.sin(ang)
    F2t = np.concatenate([Frt, Fit], axis=0).astype(np.float32)  # (2Mp, N)

    # hermitian-symmetry folding factor c_k and irfft 1/N normalization
    c = np.full((M,), 2.0, dtype=np.float64)
    c[0] = 1.0
    if N % 2 == 0 and M - 1 == N // 2:
        c[-1] = 1.0
    Gr = np.zeros((Mp, Np), np.float64); Gr[:M, :N] = (c[:, None] / N) * np.cos(ang)
    Gi = np.zeros((Mp, Np), np.float64); Gi[:M, :N] = -(c[:, None] / N) * np.sin(ang)
    return (jnp.asarray(F2t),
            jnp.asarray(Gr.astype(np.float32)),
            jnp.asarray(Gi.astype(np.float32)))


def spectral_conv1d(x, w_real, w_imag, *, block_b=None):
    """FNO SpectralConv1d forward.  x: (B, Ci, N) f32; w_*: (Ci, Co, M) f32."""
    B, Ci, N = x.shape
    _, Co, M = w_real.shape
    assert M <= N // 2 + 1

    Mp = _round_up(M, 8)      # modes live on the sublane axis everywhere -> 8-pad only
    Np = _round_up(N, 128)    # lane-dense output stores; sliced back to N on the host

    F2t, Gr, Gi = _build_bases(N, M, Mp, Np)

    # Mode-major, zero-padded weight combos (hoisted out of the kernel).
    wr = jnp.zeros((Mp, Ci, Co), jnp.float32).at[:M].set(
        jnp.transpose(w_real.astype(jnp.float32), (2, 0, 1)))
    wi = jnp.zeros((Mp, Ci, Co), jnp.float32).at[:M].set(
        jnp.transpose(w_imag.astype(jnp.float32), (2, 0, 1)))
    w1, w2, w3 = wr, wi - wr, wr + wi

    # --- VMEM accounting (generation-aware) ---
    resident_once = 4 * (2 * Mp * N + 2 * Mp * Np + 3 * Mp * Ci * Co)
    resident = 2 * resident_once          # assume pipeline double-buffers residents

    def tile_bytes(tb):
        stream = 2 * 4 * (tb * Ci * N + tb * Co * Np)   # double-buffered x / out blocks
        temps = 4 * (tb * Ci * N                        # flattened x tile (worst case copy)
                     + 4 * Mp * tb * Ci                 # Xt + Xr/Xi
                     + 7 * Mp * tb * Co                 # k1..k3, Yr/Yi (both layouts)
                     + 2 * tb * Co * Np)                # stage-3 partial sums
        return stream + temps

    cap = _vmem_capacity_bytes()
    budget = int(0.65 * cap)              # ~83 MiB on v5e/v6e, ~41 MiB on v7x
    vmem_limit = (cap * 7) // 8           # never exceeds physical per-core VMEM

    if block_b is None:
        # >= 2 grid steps when B >= 2: spans both v7x TensorCores + gives DMA overlap.
        cap_tb = min(max(1, (B + 1) // 2), 256)
        block_b = 1
        for tb in range(1, cap_tb + 1):
            if resident + tile_bytes(tb) <= budget:
                block_b = tb
    block_b = max(1, min(int(block_b), B))

    # No divisor requirement: pad the batch and slice the result.
    n_blocks = -(-B // block_b)
    Bp = n_blocks * block_b
    x_p = x if Bp == B else jnp.pad(x, ((0, Bp - B), (0, 0), (0, 0)))

    flops = 2 * Bp * Mp * (2 * Ci * N + 3 * Ci * Co + 2 * Co * Np)
    cost = pl.CostEstimate(
        flops=int(flops),
        transcendentals=0,
        bytes_accessed=int(4 * (Bp * Ci * N + Bp * Co * Np) + resident_once),
    )

    out_p = pl.pallas_call(
        _spectral_conv1d_kernel,
        out_shape=jax.ShapeDtypeStruct((Bp, Co, Np), jnp.float32),
        grid_spec=pltpu.PrefetchScalarGridSpec(
            num_scalar_prefetch=0,
            grid=(n_blocks,),
            in_specs=[
                pl.BlockSpec((block_b, Ci, N), lambda b: (b, 0, 0)),   # streamed x tile
                pl.BlockSpec((2 * Mp, N), lambda b: (0, 0)),           # resident fwd basis
                pl.BlockSpec((Mp, Ci, Co), lambda b: (0, 0, 0)),       # resident weights
                pl.BlockSpec((Mp, Ci, Co), lambda b: (0, 0, 0)),
                pl.BlockSpec((Mp, Ci, Co), lambda b: (0, 0, 0)),
                pl.BlockSpec((Mp, Np), lambda b: (0, 0)),              # resident inv basis (real)
                pl.BlockSpec((Mp, Np), lambda b: (0, 0)),              # resident inv basis (imag)
            ],
            out_specs=pl.BlockSpec((block_b, Co, Np), lambda b: (b, 0, 0)),
        ),
        compiler_params=pltpu.CompilerParams(
            dimension_semantics=("parallel",),    # batch tiles across TensorCores
            vmem_limit_bytes=int(vmem_limit),
        ),
        cost_estimate=cost,
    )(x_p, F2t, w1, w2, w3, Gr, Gi)

    return out_p[:B, :, :N]


def spectral_conv1d_ref(x, w_real, w_imag):
    """Pure-JAX reference replicating the PyTorch forward exactly."""
    B, Ci, N = x.shape
    _, Co, M = w_real.shape
    w = w_real.astype(jnp.complex64) + 1j * w_imag.astype(jnp.complex64)
    x_ft = jnp.fft.rfft(x, axis=-1)                                   # (B, Ci, N//2+1)
    y = jnp.einsum('bix,iox->box', x_ft[:, :, :M], w)                 # (B, Co, M)
    out_ft = jnp.zeros((B, Co, N // 2 + 1), dtype=jnp.complex64)
    out_ft = out_ft.at[:, :, :M].set(y)
    return jnp.fft.irfft(out_ft, n=N, axis=-1).astype(jnp.float32)


if __name__ == "__main__":
    B, Cin, Cout, N, modes1 = 2, 4, 4, 16, 8
    key = jax.random.PRNGKey(0)
    kx, kwr, kwi = jax.random.split(key, 3)

    x = jax.random.normal(kx, (B, Cin, N), dtype=jnp.float32)

    # weights1 = scale * torch.rand(Cin, Cout, modes1, dtype=cfloat)
    scale = 1.0 / (Cin * Cout)
    w_real = scale * jax.random.uniform(kwr, (Cin, Cout, modes1), dtype=jnp.float32)
    w_imag = scale * jax.random.uniform(kwi, (Cin, Cout, modes1), dtype=jnp.float32)

    # block_b=1 -> 2-step batch grid, exercising the BlockSpec pipeline.
    out = spectral_conv1d(x, w_real, w_imag, block_b=1)
    out = jax.block_until_ready(out)

    ref = jax.block_until_ready(spectral_conv1d_ref(x, w_real, w_imag))
    assert out.shape == (B, Cout, N)
    np.testing.assert_allclose(np.asarray(out), np.asarray(ref), atol=1e-4, rtol=1e-4)

    print("KERNEL_OK")
</pallas_src>

<mosaic_0001>
module attributes {stable_mosaic.version = 11 : i64} {
  func.func @_spectral_conv1d_kernel(%arg0: i32, %arg1: memref<1x4x16xf32, #tpu.memory_space<vmem>>, %arg2: memref<16x16xf32, #tpu.memory_space<vmem>>, %arg3: memref<8x4x4xf32, #tpu.memory_space<vmem>>, %arg4: memref<8x4x4xf32, #tpu.memory_space<vmem>>, %arg5: memref<8x4x4xf32, #tpu.memory_space<vmem>>, %arg6: memref<8x128xf32, #tpu.memory_space<vmem>>, %arg7: memref<8x128xf32, #tpu.memory_space<vmem>>, %arg8: memref<1x4x128xf32, #tpu.memory_space<vmem>>) attributes {dimension_semantics = [#tpu.dimension_semantics<parallel>], iteration_bounds = array<i64: 2>, scalar_prefetch = 0 : i64, scratch_operands = 0 : i64, tpu.core_type = #tpu.core_type<tc>, window_params = [{transform_indices = @transform_0, window_bounds = array<i64: 1, 4, 16>}, {pipeline_mode = #tpu.pipeline_mode<synchronous>, transform_indices = @transform_1, window_bounds = array<i64: 16, 16>}, {pipeline_mode = #tpu.pipeline_mode<synchronous>, transform_indices = @transform_2, window_bounds = array<i64: 8, 4, 4>}, {pipeline_mode = #tpu.pipeline_mode<synchronous>, transform_indices = @transform_3, window_bounds = array<i64: 8, 4, 4>}, {pipeline_mode = #tpu.pipeline_mode<synchronous>, transform_indices = @transform_4, window_bounds = array<i64: 8, 4, 4>}, {pipeline_mode = #tpu.pipeline_mode<synchronous>, transform_indices = @transform_5, window_bounds = array<i64: 8, 128>}, {pipeline_mode = #tpu.pipeline_mode<synchronous>, transform_indices = @transform_6, window_bounds = array<i64: 8, 128>}, {transform_indices = @transform_7, window_bounds = array<i64: 1, 4, 128>}]} {
    %c0 = arith.constant 0 : index
    %c0_0 = arith.constant 0 : index
    %c0_1 = arith.constant 0 : index
    %0 = vector.load %arg1[%c0, %c0_0, %c0_1] : memref<1x4x16xf32, #tpu.memory_space<vmem>>, vector<1x4x16xf32>
    %1 = vector.shape_cast %0 : vector<1x4x16xf32> to vector<4x16xf32>
    %c0_2 = arith.constant 0 : index
    %c0_3 = arith.constant 0 : index
    %2 = vector.load %arg2[%c0_2, %c0_3] : memref<16x16xf32, #tpu.memory_space<vmem>>, vector<16x16xf32>
    %cst = arith.constant dense<0.000000e+00> : vector<16x4xf32>
    %3 = tpu.matmul %2, %1, %cst {dimension_numbers = #tpu.dot_dimension_numbers<[1], [1], [0], [0], [0, 0, 1, 0], [], []>} : vector<16x16xf32>, vector<4x16xf32>, vector<16x4xf32> -> vector<16x4xf32>
    %4 = vector.extract_strided_slice %3 {offsets = [0, 0], sizes = [8, 4], strides = [1, 1]} : vector<16x4xf32> to vector<8x4xf32>
    %5 = vector.shape_cast %4 : vector<8x4xf32> to vector<8x1x4xf32>
    %6 = vector.extract_strided_slice %3 {offsets = [8, 0], sizes = [8, 4], strides = [1, 1]} : vector<16x4xf32> to vector<8x4xf32>
    %7 = vector.shape_cast %6 : vector<8x4xf32> to vector<8x1x4xf32>
    %8 = arith.addf %5, %7 : vector<8x1x4xf32>
    %c0_4 = arith.constant 0 : index
    %c0_5 = arith.constant 0 : index
    %c0_6 = arith.constant 0 : index
    %9 = vector.load %arg3[%c0_4, %c0_5, %c0_6] : memref<8x4x4xf32, #tpu.memory_space<vmem>>, vector<8x4x4xf32>
    %cst_7 = arith.constant dense<0.000000e+00> : vector<8x1x4xf32>
    %10 = tpu.matmul %8, %9, %cst_7 {dimension_numbers = #tpu.dot_dimension_numbers<[2], [1], [1], [2], [0, 0, 0, 1, 1, 2], [0], [0]>} : vector<8x1x4xf32>, vector<8x4x4xf32>, vector<8x1x4xf32> -> vector<8x1x4xf32>
    %c0_8 = arith.constant 0 : index
    %c0_9 = arith.constant 0 : index
    %c0_10 = arith.constant 0 : index
    %11 = vector.load %arg4[%c0_8, %c0_9, %c0_10] : memref<8x4x4xf32, #tpu.memory_space<vmem>>, vector<8x4x4xf32>
    %cst_11 = arith.constant dense<0.000000e+00> : vector<8x1x4xf32>
    %12 = tpu.matmul %5, %11, %cst_11 {dimension_numbers = #tpu.dot_dimension_numbers<[2], [1], [1], [2], [0, 0, 0, 1, 1, 2], [0], [0]>} : vector<8x1x4xf32>, vector<8x4x4xf32>, vector<8x1x4xf32> -> vector<8x1x4xf32>
    %c0_12 = arith.constant 0 : index
    %c0_13 = arith.constant 0 : index
    %c0_14 = arith.constant 0 : index
    %13 = vector.load %arg5[%c0_12, %c0_13, %c0_14] : memref<8x4x4xf32, #tpu.memory_space<vmem>>, vector<8x4x4xf32>
    %cst_15 = arith.constant dense<0.000000e+00> : vector<8x1x4xf32>
    %14 = tpu.matmul %7, %13, %cst_15 {dimension_numbers = #tpu.dot_dimension_numbers<[2], [1], [1], [2], [0, 0, 0, 1, 1, 2], [0], [0]>} : vector<8x1x4xf32>, vector<8x4x4xf32>, vector<8x1x4xf32> -> vector<8x1x4xf32>
    %15 = arith.subf %10, %14 : vector<8x1x4xf32>
    %16 = vector.shape_cast %15 : vector<8x1x4xf32> to vector<8x4xf32>
    %17 = arith.addf %10, %12 : vector<8x1x4xf32>
    %18 = vector.shape_cast %17 : vector<8x1x4xf32> to vector<8x4xf32>
    %c0_16 = arith.constant 0 : index
    %c0_17 = arith.constant 0 : index
    %19 = vector.load %arg6[%c0_16, %c0_17] : memref<8x128xf32, #tpu.memory_space<vmem>>, vector<8x128xf32>
    %cst_18 = arith.constant dense<0.000000e+00> : vector<4x128xf32>
    %20 = tpu.matmul %16, %19, %cst_18 {dimension_numbers = #tpu.dot_dimension_numbers<[0], [0], [1], [1], [0, 1, 1, 1], [], []>} : vector<8x4xf32>, vector<8x128xf32>, vector<4x128xf32> -> vector<4x128xf32>
    %c0_19 = arith.constant 0 : index
    %c0_20 = arith.constant 0 : index
    %21 = vector.load %arg7[%c0_19, %c0_20] : memref<8x128xf32, #tpu.memory_space<vmem>>, vector<8x128xf32>
    %cst_21 = arith.constant dense<0.000000e+00> : vector<4x128xf32>
    %22 = tpu.matmul %18, %21, %cst_21 {dimension_numbers = #tpu.dot_dimension_numbers<[0], [0], [1], [1], [0, 1, 1, 1], [], []>} : vector<8x4xf32>, vector<8x128xf32>, vector<4x128xf32> -> vector<4x128xf32>
    %23 = arith.addf %20, %22 : vector<4x128xf32>
    %24 = vector.shape_cast %23 : vector<4x128xf32> to vector<1x4x128xf32>
    %c0_22 = arith.constant 0 : index
    %c0_23 = arith.constant 0 : index
    %c0_24 = arith.constant 0 : index
    %25 = vector.load %arg8[%c0_22, %c0_23, %c0_24] : memref<1x4x128xf32, #tpu.memory_space<vmem>>, vector<1x4x128xf32>
    tpu.vector_store %arg8[%c0_22, %c0_23, %c0_24], %24 {strides = array<i32>} : memref<1x4x128xf32, #tpu.memory_space<vmem>>, vector<1x4x128xf32>,
    return
  }
  func.func @transform_0(%arg0: i32) -> (i32, i32, i32) {
    %c0_i32 = arith.constant 0 : i32
    %c0_i32_0 = arith.constant 0 : i32
    %c0_i32_1 = arith.constant 0 : i32
    return %arg0, %c0_i32, %c0_i32_0 : i32, i32, i32
  }
  func.func @transform_1(%arg0: i32) -> (i32, i32) {
    %c0_i32 = arith.constant 0 : i32
    %c0_i32_0 = arith.constant 0 : i32
    %c0_i32_1 = arith.constant 0 : i32
    return %c0_i32, %c0_i32_0 : i32, i32
  }
  func.func @transform_2(%arg0: i32) -> (i32, i32, i32) {
    %c0_i32 = arith.constant 0 : i32
    %c0_i32_0 = arith.constant 0 : i32
    %c0_i32_1 = arith.constant 0 : i32
    %c0_i32_2 = arith.constant 0 : i32
    return %c0_i32, %c0_i32_0, %c0_i32_1 : i32, i32, i32
  }
  func.func @transform_3(%arg0: i32) -> (i32, i32, i32) {
    %c0_i32 = arith.constant 0 : i32
    %c0_i32_0 = arith.constant 0 : i32
    %c0_i32_1 = arith.constant 0 : i32
    %c0_i32_2 = arith.constant 0 : i32
    return %c0_i32, %c0_i32_0, %c0_i32_1 : i32, i32, i32
  }
  func.func @transform_4(%arg0: i32) -> (i32, i32, i32) {
    %c0_i32 = arith.constant 0 : i32
    %c0_i32_0 = arith.constant 0 : i32
    %c0_i32_1 = arith.constant 0 : i32
    %c0_i32_2 = arith.constant 0 : i32
    return %c0_i32, %c0_i32_0, %c0_i32_1 : i32, i32, i32
  }
  func.func @transform_5(%arg0: i32) -> (i32, i32) {
    %c0_i32 = arith.constant 0 : i32
    %c0_i32_0 = arith.constant 0 : i32
    %c0_i32_1 = arith.constant 0 : i32
    return %c0_i32, %c0_i32_0 : i32, i32
  }
  func.func @transform_6(%arg0: i32) -> (i32, i32) {
    %c0_i32 = arith.constant 0 : i32
    %c0_i32_0 = arith.constant 0 : i32
    %c0_i32_1 = arith.constant 0 : i32
    return %c0_i32, %c0_i32_0 : i32, i32
  }
  func.func @transform_7(%arg0: i32) -> (i32, i32, i32) {
    %c0_i32 = arith.constant 0 : i32
    %c0_i32_0 = arith.constant 0 : i32
    %c0_i32_1 = arith.constant 0 : i32
    return %arg0, %c0_i32, %c0_i32_0 : i32, i32, i32
  }
}

</mosaic_0001>

<bundles_post_ra>
// kernel: tpu_custom_call.1
= control target key start
LH: loop header
LB: loop body
LE: loop exit
PB: predicated region body
PF: predicated region fallthrough
CT: control target
= control target key end

     0   :  { %12 = vsyncpa [#allocation3], 0  ;;  %s3507_s0 = inlined_call_operand.vmem [shape: f32[2,4,16], index: 0, kind: input, shape index: {}]   ;;  %s3508_s1 = inlined_call_operand.vmem [shape: f32[16,16], index: 1, kind: input, shape index: {}]   ;;  %s3509_s2 = inlined_call_operand.vmem [shape: f32[8,4,4], index: 2, kind: input, shape index: {}]   ;;  %s3510_s3 = inlined_call_operand.vmem [shape: f32[8,4,4], index: 3, kind: input, shape index: {}]   ;;  %s3511_s4 = inlined_call_operand.vmem [shape: f32[8,4,4], index: 4, kind: input, shape index: {}]   ;;  %s3512_s5 = inlined_call_operand.vmem [shape: f32[8,128], index: 5, kind: input, shape index: {}]   ;;  %s3513_s6 = inlined_call_operand.vmem [shape: f32[8,128], index: 6, kind: input, shape index: {}]   ;;  %s3514_s7 = inlined_call_operand.hbm [shape: f32[2,4,128], index: 7, kind: output, shape index: {}]  }
   0x1   :  { %14 = vsyncpa [#allocation3 + $0x1], 0  ;;  %s3081_s24 = smov 0   ;;  %s3083_s25 = smov 0  }
   0x2   :  { %s3085_s26 = smov 0   ;;  %s3087_s27 = smov 0  }
   0x3 LB: > { %s3102_s28 = sadd.s32 4294967295, %s3035_s27   ;;  %s2676_s29 = sadd.s32 4294967294, %s3035_s27   ;;  %s3035_s27 = sphi %s3087_s27, %s3520_s27   ;;  %s3031_s26 = sphi %s3085_s26, %s3519_s26   ;;  %s3027_s25 = sphi %s3083_s25, %s3518_s25   ;;  %s3023_s24 = sphi %s3081_s24, %s3517_s24  }
   0x4   : > { %s3106_s30 = sadd.s32 1, %s3035_s27   ;;  %s179_s8 = sadd.s32 1, %s3031_s26 }
   0x5   : > { %s176_s9 = ssub.s32 %s3035_s27, %s3106_s30  ;;  %p189_p0 = scmp.ne.s32.totalorder %s3031_s26, %s3027_s25 }
   0x6   : > { %p177_p1 = scmp.eq.s32.totalorder %s176_s9, 0  ;;  %p190_p2 = scmp.eq.s32.totalorder %s3102_s28, 1 }
   0x7   : > { %p195_p3 = scmp.ne.s32.totalorder %s3027_s25, %s3023_s24  ;;  %p196_p4 = scmp.eq.s32.totalorder %s2676_s29, 1 }
   0x8   : > { %s3117_s10 = scalar_select %p177_p1, %s3031_s26, %s179_s8  }
   0x9   : > { %p3119_p5 = por %p190_p2, %p189_p0  ;;  %p3123_p6 = por %p196_p4, %p195_p3 }
   0xa   : > { %p2679_p7 = scmp.ge.s32.totalorder %s3035_s27, 1  ;;  %p239_p8 = scmp.lt.s32.totalorder %s3035_s27, 3 }
   0xc   : > { %p240_p9 = pnand %p2679_p7, %p239_p8 }
   0xd   : > { %p270_p10 = scmp.lt.s32.totalorder (!%p240_p9), %s3102_s28, 1  ;;  %vm277_vm0 = vcmask (!%p240_p9), 130048   ;;  %v275_v0 = vld [vmem:[%s3508_s1] sm:$0xff] (!%p240_p9)  ;;  %v276_v2 = vld [vmem:[%s3508_s1 + $0x8] sm:$0xff] (!%p240_p9)  ;;  %v3037_v3 = vmov (!%p240_p9), 0.0   ;;  %vm498_vm1 = vcmask (!%p240_p9), 1043456   ;;  %v367_v8 = vlaneseq (!%p240_p9) }
   0xe   : > { %243 = sbr.rel (%p240_p9) target bundleno = 874 (0x36a), region = 48  ;;  %2796 = vmatprep.mubr.msk.f32.mxu0 (!%p240_p9), %vm277_vm0, %v275_v0  ;;  %2799 = vmatprep.subr.mxu1 (!%p240_p9), %v3037_v3  ;;  %v486_v4 = vld [vmem:[%s3509_s2] sm:$0xf] (!%p240_p9)  ;;  %vm3038_vm2 = vmmov (!%p240_p9), 0   ;;  %v490_v5 = vld [vmem:[%s3509_s2 + $0x10] sm:$0xf] (!%p240_p9) }
   0xf   : > { %2800 = vmatpush3.msk.msra.mxu1 (!%p240_p9), %vm498_vm1, %v486_v4  ;;  %2801 = vmatprep.mubr.msk.f32.mxu1 (!%p240_p9), %vm3038_vm2, %v3037_v3  ;;  %v3039_v6 = vmov (!%p240_p9), 1966171168   ;;  %v368_v10 = vshrl.u32 (!%p240_p9), %v367_v8, 7  ;;  %vm494_vm3 = vcmask (!%p240_p9), 31744   ;;  %v487_v36 = vld [vmem:[%s3509_s2 + $0x4] sm:$0xf] (!%p240_p9) }
  0x10   : > { %2804 = vmatprep.subr.mxu1 (!%p240_p9), %v3037_v3  ;;  %v365_v7 = vunpack.c.l.s4 (!%p240_p9), %v3039_v6  ;;  %v492_v44 = vld [vmem:[%s3509_s2 + $0x18] sm:$0xf] (!%p240_p9)  ;;  %v488_v48 = vld [vmem:[%s3509_s2 + $0x8] sm:$0xf] (!%p240_p9)  ;;  %v1104_v51 = vld [vmem:[%s3510_s3] sm:$0xf] (!%p240_p9) }
  0x11   : > { %v489_v52 = vld [vmem:[%s3509_s2 + $0xc] sm:$0xf] (!%p240_p9)  ;;  %v1106_v53 = vld [vmem:[%s3510_s3 + $0x8] sm:$0xf] (!%p240_p9)  ;;  %v491_v54 = vld [vmem:[%s3509_s2 + $0x14] sm:$0xf] (!%p240_p9) }
  0x12   : > { %v366_v9 = vunpack.c.0.s8 (!%p240_p9), %v365_v7  ;;  %v1108_v55 = vld [vmem:[%s3510_s3 + $0x10] sm:$0xf] (!%p240_p9)  ;;  %v493_v56 = vld [vmem:[%s3509_s2 + $0x1c] sm:$0xf] (!%p240_p9)  ;;  %v1110_v57 = vld [vmem:[%s3510_s3 + $0x18] sm:$0xf] (!%p240_p9) }
  0x13   : > { %v1105_v58 = vld [vmem:[%s3510_s3 + $0x4] sm:$0xf] (!%p240_p9)  ;;  %v1712_v59 = vld [vmem:[%s3511_s4] sm:$0xf] (!%p240_p9)  ;;  %v1107_v60 = vld [vmem:[%s3510_s3 + $0xc] sm:$0xf] (!%p240_p9) }
  0x14   : > { %v369_v11 = vsub.s32 (!%p240_p9), %v366_v9, %v368_v10  ;;  %v1714_v61 = vld [vmem:[%s3511_s4 + $0x8] sm:$0xf] (!%p240_p9)  ;;  %v1109_v62 = vld [vmem:[%s3510_s3 + $0x14] sm:$0xf] (!%p240_p9)  ;;  %v1716_v63 = vld [vmem:[%s3511_s4 + $0x10] sm:$0xf] (!%p240_p9) }
  0x15   : > { %s271_s15 = scalar_select %p270_p10, %s3102_s28, 1  ;;  %v1111_v0 = vld [vmem:[%s3510_s3 + $0x1c] sm:$0xf]  ;;  %v1715_v4 = vld [vmem:[%s3511_s4 + $0xc] sm:$0xf]  ;;  %v2337_v7 = vld [vmem:[%s3513_s6] sm:$0xff] }
  0x16   : > { %v1719_v6 = vld [vmem:[%s3511_s4 + $0x1c] sm:$0xf]  ;;  %vm2347_vm4 = vcmask 1041409   ;;  %vm2350_vm5 = vcmask 1042434   ;;  %vm2353_vm6 = vcmask 1043459   ;;  %vm2356_vm7 = vcmask 1044484  }
  0x17   : > { %s2681_s16 = sshll.u32 %s271_s15, 2  ;;  %vm2359_vm8 = vcmask 1045509   ;;  %vm2362_vm9 = vcmask 1046534   ;;  %vm2365_vm10 = vcmask 1047559   ;;  %vm2400_vm11 = vcmask 64512   ;;  %s267_s18 = sand.u32 1, %s3027_s25  }
  0x18   : > { %s273_s19 = scalar_lea.vmem %s3507_s0, %s2681_s16  ;;  %s2736_s22 = sshll.u32 %s3102_s28, 6 }
  0x19   : > { %v274_v1 = vld [vmem:[%s273_s19] sm:$0xf]  ;;  %s2680_s19 = sshll.u32 %s267_s18, 2  ;;  %s3467_s8 = scalar_lea.hbm %s3514_s7, %s2736_s22 }
  0x1a   : > { %2794 = vmatprep.subr.msk.mxu0 %vm277_vm0, %v274_v1  ;;  %s269_s20 = scalar_lea.vmem [#allocation2], %s2680_s19  ;;  %s2604_s9 = scalar_lea.sflag [#allocation3], %s267_s18 }
  0x1b   : > { %2795 = vmatpush3.xpose.msk.msra.mxu0 %vm277_vm0, %v274_v1  ;;  %v1718_v1 = vld [vmem:[%s3511_s4 + $0x18] sm:$0xf]  ;;  %s2617_s21 = sshll.u32 %s269_s20, 4  ;;  %s3040_s28 = smov [#allocation2]   ;;  %s3462_s21 = int_to_ptr.vmem [resolvable:$true] %s2617_s21 }
  0x1c   : > { %2819 = vmatprep.subr.mxu0 %v3037_v3  ;;  %s2973_s13 = scalar_lea.vmem %s3462_s21, 64  ;;  %s2977_s14 = sshll.u32 %s3040_s28, 4  ;;  %s2978_s14 = int_to_ptr.vmem [resolvable:$false] %s2977_s14 }
  0x1d   : > { %p2974_p11 = scmp.ne.s32.totalorder %s3462_s21, %s2973_s13  ;;  %s2979_s15 = scalar_lea.vmem %s2978_s14, 128 }
  0x1e   : > { %2797 = vmatmul.mubr.msk.f32.vlgmr.msra.gmra.mrb[0].mxu0 %vm277_vm0, %v276_v2  ;;  %v1713_v2 = vld [vmem:[%s3511_s4 + $0x4] sm:$0xf]  ;;  %p2980_p0 = scmp.lt.s32.totalorder %s3462_s21, %s2978_s14  ;;  %p2981_p1 = scmp.lt.s32.totalorder %s2979_s15, %s2973_s13 }
  0x1f   : > { %2821 = vmatprep.mubr.msk.f32.mxu0 %vm3038_vm2, %v3037_v3  ;;  %2820 = vmatpush3.msk.msra.mxu0 %vm498_vm1, %v490_v5  ;;  %v1717_v5 = vld [vmem:[%s3511_s4 + $0x14] sm:$0xf]  ;;  %p2975_p12 = pnand %p2974_p11, %p3119_p5 }
  0x20   : > { %2829 = vmatprep.subr.mxu0 %v3037_v3  ;;  %p2982_p2 = por %p2981_p1, %p2980_p0 }
  0x21   : > { %p2976_p13 = pneg %p2975_p12 }
  0x23   : > { %p2983_p3 = pnand %p2982_p2, %p2976_p13 }
  0xf1   : > { %v2798_v12 = vpop.f32.mrb[0].mxu0 }
  0xf2   : > { %v421_v13 = vcombine.high %v2798_v12, %v2798_v12  ;;  %v428_v14 = vrot.slane %v2798_v12, %v369_v11  ;;  %v353_v15 = vpop.f32.mrb[1].mxu0 }
  0xf3   : > { %v363_v16 = vcombine.high %v353_v15, %v353_v15  ;;  %v370_v17 = vrot.slane %v353_v15, %v369_v11 }
  0xf4   : > { %v435_v18 = vrot.slane %v421_v13, %v369_v11  ;;  %v436_v19 = vcombine.high %v428_v14, %v428_v14  ;;  %v3156_v20 = vrot.slane %v428_v14, %v369_v11 }
  0xf5   : > { %v377_v21 = vrot.slane %v363_v16, %v369_v11  ;;  %v378_v22 = vcombine.high %v370_v17, %v370_v17  ;;  %v386_v23 = vrot.slane %v370_v17, %v369_v11 }
  0xf6   : > { %v437_v24 = vcombine.high %v435_v18, %v435_v18  ;;  %v3158_v25 = vrot.slane %v435_v18, %v369_v11  ;;  %v3160_v26 = vrot.slane %v436_v19, %v369_v11  ;;  %v3164_v27 = vcombine.high %v3156_v20, %v3156_v20 }
  0xf7   : > { %v379_v28 = vcombine.high %v377_v21, %v377_v21  ;;  %v3166_v29 = vrot.slane %v377_v21, %v369_v11  ;;  %v3168_v30 = vrot.slane %v378_v22, %v369_v11  ;;  %v408_v31 = vcombine.high %v386_v23, %v386_v23 }
  0xf8   : > { %v3170_v32 = vrot.slane %v437_v24, %v369_v11  ;;  %v3174_v33 = vcombine.high %v3158_v25, %v3158_v25  ;;  %v3178_v34 = vcombine.high %v3160_v26, %v3160_v26  ;;  %v478_v35 = vadd.f32 %v3156_v20, %v386_v23 }
  0xf9   : > { %v3184_v37 = vrot.slane %v379_v28, %v369_v11  ;;  %v3188_v38 = vcombine.high %v3166_v29, %v3166_v29  ;;  %v3192_v39 = vcombine.high %v3168_v30, %v3168_v30  ;;  %v479_v40 = vadd.f32 %v3160_v26, %v3168_v30 }
  0xfa   : > { %v3198_v41 = vcombine.high %v3170_v32, %v3170_v32  ;;  %v480_v42 = vadd.f32 %v3164_v27, %v408_v31  ;;  %v482_v43 = vadd.f32 %v3158_v25, %v3166_v29  ;;  %2802 = vmatmul.mubr.msk.f32.vlgmr.msra.gmra.mrb[0].mxu1 %vm494_vm3, %v478_v35 }
  0xfb   : > { %v3209_v45 = vcombine.high %v3184_v37, %v3184_v37  ;;  %2805 = vmatpush3.msk.msra.mxu1 %vm498_vm1, %v487_v36  ;;  %2806 = vmatprep.mubr.msk.f32.mxu1 %vm3038_vm2, %v3037_v3  ;;  %v484_v46 = vadd.f32 %v3174_v33, %v3188_v38  ;;  %v481_v47 = vadd.f32 %v3178_v34, %v3192_v39 }
  0xfc   : > { %2822 = vmatmul.mubr.msk.f32.vlgmr.msra.gmra.mrb[2].mxu0 %vm494_vm3, %v482_v43  ;;  %2809 = vmatprep.subr.mxu1 %v3037_v3  ;;  %v483_v49 = vadd.f32 %v3170_v32, %v3184_v37 }
  0xfd   : > { %2830 = vmatpush3.msk.msra.mxu0 %vm498_vm1, %v492_v44  ;;  %2831 = vmatprep.mubr.msk.f32.mxu0 %vm3038_vm2, %v3037_v3  ;;  %v485_v50 = vadd.f32 %v3198_v41, %v3209_v45 }
  0xfe   : > { %2807 = vmatmul.mubr.msk.f32.vlgmr.msra.gmra.mrb[2].mxu1 %vm494_vm3, %v479_v40  ;;  %2839 = vmatprep.subr.mxu0 %v3037_v3 }
  0xff   : > { %2810 = vmatpush3.msk.msra.mxu1 %vm498_vm1, %v488_v48  ;;  %2811 = vmatprep.mubr.msk.f32.mxu1 %vm3038_vm2, %v3037_v3 }
 0x100   : > { %2832 = vmatmul.mubr.msk.f32.vlgmr.msra.gmra.mrb[4].mxu0 %vm494_vm3, %v484_v46  ;;  %2814 = vmatprep.subr.mxu1 %v3037_v3 }
 0x101   : > { %2840 = vmatpush3.msk.msra.mxu0 %vm498_vm1, %v1104_v51  ;;  %2841 = vmatprep.mubr.msk.f32.mxu0 %vm3038_vm2, %v3037_v3 }
 0x102   : > { %2812 = vmatmul.mubr.msk.f32.vlgmr.msra.gmra.mrb[4].mxu1 %vm494_vm3, %v480_v42  ;;  %2849 = vmatprep.subr.mxu0 %v3037_v3 }
 0x103   : > { %2815 = vmatpush3.msk.msra.mxu1 %vm498_vm1, %v489_v52  ;;  %2816 = vmatprep.mubr.msk.f32.mxu1 %vm3038_vm2, %v3037_v3 }
 0x104   : > { %2842 = vmatmul.mubr.msk.f32.vlgmr.msra.gmra.mrb[6].mxu0 %vm494_vm3, %v386_v23  ;;  %2824 = vmatprep.subr.mxu1 %v3037_v3 }
 0x105   : > { %2850 = vmatpush3.msk.msra.mxu0 %vm498_vm1, %v1106_v53  ;;  %2851 = vmatprep.mubr.msk.f32.mxu0 %vm3038_vm2, %v3037_v3 }
 0x106   : > { %2817 = vmatmul.mubr.msk.f32.vlgmr.msra.gmra.mrb[6].mxu1 %vm494_vm3, %v481_v47  ;;  %2859 = vmatprep.subr.mxu0 %v3037_v3 }
 0x107   : > { %2825 = vmatpush3.msk.msra.mxu1 %vm498_vm1, %v491_v54  ;;  %2826 = vmatprep.mubr.msk.f32.mxu1 %vm3038_vm2, %v3037_v3 }
 0x108   : > { %2852 = vmatmul.mubr.msk.f32.vlgmr.msra.gmra.mrb[8].mxu0 %vm494_vm3, %v408_v31  ;;  %2834 = vmatprep.subr.mxu1 %v3037_v3 }
 0x109   : > { %2860 = vmatpush3.msk.msra.mxu0 %vm498_vm1, %v1108_v55  ;;  %2861 = vmatprep.mubr.msk.f32.mxu0 %vm3038_vm2, %v3037_v3 }
 0x10a   : > { %2827 = vmatmul.mubr.msk.f32.vlgmr.msra.gmra.mrb[8].mxu1 %vm494_vm3, %v483_v49  ;;  %2869 = vmatprep.subr.mxu0 %v3037_v3 }
 0x10b   : > { %2835 = vmatpush3.msk.msra.mxu1 %vm498_vm1, %v493_v56  ;;  %2836 = vmatprep.mubr.msk.f32.mxu1 %vm3038_vm2, %v3037_v3 }
 0x10c   : > { %2862 = vmatmul.mubr.msk.f32.vlgmr.msra.gmra.mrb[10].mxu0 %vm494_vm3, %v3166_v29  ;;  %2844 = vmatprep.subr.mxu1 %v3037_v3 }
 0x10d   : > { %2870 = vmatpush3.msk.msra.mxu0 %vm498_vm1, %v1110_v57  ;;  %2871 = vmatprep.mubr.msk.f32.mxu0 %vm3038_vm2, %v3037_v3 }
 0x10e   : > { %2837 = vmatmul.mubr.msk.f32.vlgmr.msra.gmra.mrb[10].mxu1 %vm494_vm3, %v485_v50  ;;  %2879 = vmatprep.subr.mxu0 %v3037_v3 }
 0x10f   : > { %2845 = vmatpush3.msk.msra.mxu1 %vm498_vm1, %v1105_v58  ;;  %2846 = vmatprep.mubr.msk.f32.mxu1 %vm3038_vm2, %v3037_v3 }
 0x110   : > { %2872 = vmatmul.mubr.msk.f32.vlgmr.msra.gmra.mrb[12].mxu0 %vm494_vm3, %v3188_v38  ;;  %2854 = vmatprep.subr.mxu1 %v3037_v3 }
 0x111   : > { %2880 = vmatpush3.msk.msra.mxu0 %vm498_vm1, %v1712_v59  ;;  %2881 = vmatprep.mubr.msk.f32.mxu0 %vm3038_vm2, %v3037_v3 }
 0x112   : > { %2847 = vmatmul.mubr.msk.f32.vlgmr.msra.gmra.mrb[12].mxu1 %vm494_vm3, %v3168_v30  ;;  %2889 = vmatprep.subr.mxu0 %v3037_v3 }
 0x113   : > { %2855 = vmatpush3.msk.msra.mxu1 %vm498_vm1, %v1107_v60  ;;  %2856 = vmatprep.mubr.msk.f32.mxu1 %vm3038_vm2, %v3037_v3 }
 0x114   : > { %2882 = vmatmul.mubr.msk.f32.vlgmr.msra.gmra.mrb[14].mxu0 %vm494_vm3, %v3156_v20  ;;  %2864 = vmatprep.subr.mxu1 %v3037_v3 }
 0x115   : > { %2890 = vmatpush3.msk.msra.mxu0 %vm498_vm1, %v1714_v61  ;;  %2891 = vmatprep.mubr.msk.f32.mxu0 %vm3038_vm2, %v3037_v3 }
 0x116   : > { %2857 = vmatmul.mubr.msk.f32.vlgmr.msra.gmra.mrb[14].mxu1 %vm494_vm3, %v3192_v39  ;;  %2899 = vmatprep.subr.mxu0 %v3037_v3 }
 0x117   : > { %2865 = vmatpush3.msk.msra.mxu1 %vm498_vm1, %v1109_v62  ;;  %2866 = vmatprep.mubr.msk.f32.mxu1 %vm3038_vm2, %v3037_v3 }
 0x118   : > { %2892 = vmatmul.mubr.msk.f32.vlgmr.msra.gmra.mrb[16].mxu0 %vm494_vm3, %v3164_v27  ;;  %2874 = vmatprep.subr.mxu1 %v3037_v3 }
 0x119   : > { %2900 = vmatpush3.msk.msra.mxu0 %vm498_vm1, %v1716_v63  ;;  %2901 = vmatprep.mubr.msk.f32.mxu0 %vm3038_vm2, %v3037_v3 }
 0x11a   : > { %2867 = vmatmul.mubr.msk.f32.vlgmr.msra.gmra.mrb[16].mxu1 %vm494_vm3, %v3184_v37  ;;  %2909 = vmatprep.subr.mxu0 %v3037_v3 }
 0x11b   : > { %2875 = vmatpush3.msk.msra.mxu1 %vm498_vm1, %v1111_v0  ;;  %2876 = vmatprep.mubr.msk.f32.mxu1 %vm3038_vm2, %v3037_v3 }
 0x11c   : > { %2902 = vmatmul.mubr.msk.f32.vlgmr.msra.gmra.mrb[18].mxu0 %vm494_vm3, %v3158_v25  ;;  %2884 = vmatprep.subr.mxu1 %v3037_v3 }
 0x11d   : > { %2910 = vmatpush3.msk.msra.mxu0 %vm498_vm1, %v1718_v1  ;;  %2911 = vmatprep.mubr.msk.f32.mxu0 %vm3038_vm2, %v3037_v3 }
 0x11e   : > { %2877 = vmatmul.mubr.msk.f32.vlgmr.msra.gmra.mrb[18].mxu1 %vm494_vm3, %v3209_v45  ;;  %2919 = vmatprep.subr.mxu0 %v3037_v3 }
 0x11f   : > { %2885 = vmatpush3.msk.msra.mxu1 %vm498_vm1, %v1713_v2  ;;  %2886 = vmatprep.mubr.msk.f32.mxu1 %vm3038_vm2, %v3037_v3 }
 0x120   : > { %2912 = vmatmul.mubr.msk.f32.vlgmr.msra.gmra.mrb[20].mxu0 %vm494_vm3, %v3174_v33  ;;  %2894 = vmatprep.subr.mxu1 %v3037_v3 }
 0x121   : > { %2921 = vmatprep.mubr.msk.f32.mxu0 %vm3038_vm2, %v3037_v3  ;;  %2920 = vmatpush3.msra.mxu0 %v2337_v7 }
 0x122   : > { %2887 = vmatmul.mubr.msk.f32.vlgmr.msra.gmra.mrb[20].mxu1 %vm494_vm3, %v3160_v26  ;;  %2924 = vmatprep.subr.mxu0 %v3037_v3 }
 0x123   : > { %2895 = vmatpush3.msk.msra.mxu1 %vm498_vm1, %v1715_v4  ;;  %2896 = vmatprep.mubr.msk.f32.mxu1 %vm3038_vm2, %v3037_v3 }
 0x124   : > { %2904 = vmatprep.subr.mxu1 %v3037_v3 }
 0x126   : > { %2897 = vmatmul.mubr.msk.f32.vlgmr.msra.gmra.mrb[22].mxu1 %vm494_vm3, %v3178_v34 }
 0x127   : > { %2905 = vmatpush3.msk.msra.mxu1 %vm498_vm1, %v1717_v5  ;;  %2906 = vmatprep.mubr.msk.f32.mxu1 %vm3038_vm2, %v3037_v3 }
 0x128   : > { %2914 = vmatprep.subr.mxu1 %v3037_v3 }
 0x12a   : > { %2907 = vmatmul.mubr.msk.f32.vlgmr.msra.gmra.mrb[24].mxu1 %vm494_vm3, %v3170_v32 }
 0x12b   : > { %2915 = vmatpush3.msk.msra.mxu1 %vm498_vm1, %v1719_v6  ;;  %2916 = vmatprep.mubr.msk.f32.mxu1 %vm3038_vm2, %v3037_v3 }
 0x12e   : > { %2917 = vmatmul.mubr.msk.f32.vlgmr.msra.gmra.mrb[26].mxu1 %vm494_vm3, %v3198_v41 }
 0x1cd   : > { %v3409_v8 = vpop.f32.mrb[0].mxu1 }
 0x1ce   : > { %v2803_v9 = vpop.f32.mrb[1].mxu1 }
 0x1cf   : > { %v3411_v10 = vpop.f32.mrb[2].mxu0 }
 0x1d0   : > { %v2823_v11 = vpop.f32.mrb[3].mxu0 }
 0x1d1   : > { %v3413_v12 = vpop.f32.mrb[2].mxu1 }
 0x1d2   : > { %v2808_v13 = vpop.f32.mrb[3].mxu1 }
 0x1d3   : > { %v3415_v14 = vpop.f32.mrb[4].mxu0 }
 0x1d4   : > { %v2833_v15 = vpop.f32.mrb[5].mxu0 }
 0x1d5   : > { %v3417_v16 = vpop.f32.mrb[4].mxu1 }
 0x1d6   : > { %v2813_v17 = vpop.f32.mrb[5].mxu1 }
 0x1d7   : > { %v1183_v18 = vpop.f32.mrb[6].mxu0 }
 0x1d8   : > { %v2328_v19 = vadd.f32 %v1183_v18, %v3409_v8  ;;  %v2843_v20 = vpop.f32.mrb[7].mxu0 }
 0x1d9   : > { %v3420_v21 = vpop.f32.mrb[6].mxu1 }
 0x1da   : > { %v2818_v22 = vpop.f32.mrb[7].mxu1 }
 0x1db   : > { %v1333_v23 = vpop.f32.mrb[8].mxu0 }
 0x1dc   : > { %v2330_v24 = vadd.f32 %v1333_v23, %v3417_v16  ;;  %v2853_v25 = vpop.f32.mrb[9].mxu0 }
 0x1dd   : > { %v3423_v26 = vpop.f32.mrb[8].mxu1 }
 0x1de   : > { %v2828_v27 = vpop.f32.mrb[9].mxu1  ;;  %v2349_v43 = vrot.slane %v2330_v24, 6 }
 0x1df   : > { %v1483_v28 = vpop.f32.mrb[10].mxu0 }
 0x1e0   : > { %v2332_v29 = vadd.f32 %v1483_v28, %v3411_v10  ;;  %v2863_v30 = vpop.f32.mrb[11].mxu0 }
 0x1e1   : > { %v3426_v31 = vpop.f32.mrb[10].mxu1 }
 0x1e2   : > { %v2838_v32 = vpop.f32.mrb[11].mxu1  ;;  %v2355_v53 = vrot.slane %v2332_v29, 4 }
 0x1e3   : > { %v1633_v33 = vpop.f32.mrb[12].mxu0 }
 0x1e4   : > { %v2334_v34 = vadd.f32 %v1633_v33, %v3415_v14  ;;  %v2873_v35 = vpop.f32.mrb[13].mxu0 }
 0x1e5   : > { %v1258_v36 = vpop.f32.mrb[12].mxu1 }
 0x1e6   : > { %v2329_v37 = vadd.f32 %v1258_v36, %v3413_v12  ;;  %v2848_v38 = vpop.f32.mrb[13].mxu1  ;;  %v2361_v63 = vrot.slane %v2334_v34, 2 }
 0x1e7   : > { %v1791_v39 = vpop.f32.mrb[14].mxu0 }
 0x1e8   : > { %v2346_v40 = vrot.slane %v2329_v37, 7  ;;  %v2320_v41 = vsub.f32 %v3409_v8, %v1791_v39  ;;  %v2883_v42 = vpop.f32.mrb[15].mxu0 }
 0x1e9   : > { %v1408_v44 = vpop.f32.mrb[14].mxu1 }
 0x1ea   : > { %v2348_v45 = vsel %vm2347_vm4, %v2346_v40, %v2328_v19  ;;  %v2331_v46 = vadd.f32 %v1408_v44, %v3420_v21  ;;  %v2858_v47 = vpop.f32.mrb[15].mxu1 }
 0x1eb   : > { %v2351_v48 = vsel %vm2350_vm5, %v2349_v43, %v2348_v45  ;;  %v1941_v49 = vpop.f32.mrb[16].mxu0 }
 0x1ec   : > { %v2352_v50 = vrot.slane %v2331_v46, 5  ;;  %v2322_v51 = vsub.f32 %v3417_v16, %v1941_v49  ;;  %v2893_v52 = vpop.f32.mrb[17].mxu0 }
 0x1ed   : > { %v1558_v54 = vpop.f32.mrb[16].mxu1 }
 0x1ee   : > { %v2354_v55 = vsel %vm2353_vm6, %v2352_v50, %v2351_v48  ;;  %v2333_v56 = vadd.f32 %v1558_v54, %v3423_v26  ;;  %v2868_v57 = vpop.f32.mrb[17].mxu1  ;;  %v2484_v17 = vrot.slane %v2322_v51, 6 }
 0x1ef   : > { %v2091_v58 = vpop.f32.mrb[18].mxu0  ;;  %v2357_v59 = vsel %vm2356_vm7, %v2355_v53, %v2354_v55 }
 0x1f0   : > { %v2358_v60 = vrot.slane %v2333_v56, 3  ;;  %v2324_v61 = vsub.f32 %v3411_v10, %v2091_v58  ;;  %v2903_v62 = vpop.f32.mrb[19].mxu0 }
 0x1f1   : > { %v1708_v0 = vpop.f32.mrb[18].mxu1 }
 0x1f2   : > { %v2335_v1 = vadd.f32 %v1708_v0, %v3426_v31  ;;  %v2878_v2 = vpop.f32.mrb[19].mxu1  ;;  %v2360_v4 = vsel %vm2359_vm8, %v2358_v60, %v2357_v59 }
 0x1f3   : > { %v2241_v5 = vpop.f32.mrb[20].mxu0  ;;  %v2363_v6 = vsel %vm2362_vm9, %v2361_v63, %v2360_v4 }
 0x1f4   : > { %v2364_v7 = vrot.slane %v2335_v1, 1  ;;  %v2326_v8 = vsub.f32 %v3415_v14, %v2241_v5  ;;  %v2913_v9 = vpop.f32.mrb[21].mxu0  ;;  %v2488_v14 = vrot.slane %v2324_v61, 4 }
 0x1f5   : > { %v1866_v11 = vpop.f32.mrb[20].mxu1 }
 0x1f6   : > { %v2321_v10 = vsub.f32 %v3413_v12, %v1866_v11  ;;  %v2888_v13 = vpop.f32.mrb[21].mxu1  ;;  %v2366_v15 = vsel %vm2365_vm10, %v2364_v7, %v2363_v6  ;;  %v2492_v32 = vrot.slane %v2326_v8, 2 }
 0x1f7   : > { %2368 = vxpose.xlu0.b32.start.end [1/1] (short) (narrow) %v2366_v15, 8 }
 0x1f8   : > { %v2482_v16 = vrot.slane %v2321_v10, 7 }
 0x1f9   : > { %v2016_v18 = vpop.f32.mrb[22].mxu1 }
 0x1fa   : > { %v2483_v19 = vsel %vm2347_vm4, %v2482_v16, %v2320_v41  ;;  %v2323_v20 = vsub.f32 %v3420_v21, %v2016_v18  ;;  %v2898_v22 = vpop.f32.mrb[23].mxu1 }
 0x1fb   : > { %v2485_v23 = vsel %vm2350_vm5, %v2484_v17, %v2483_v19 }
 0x1fc   : > { %v2486_v24 = vrot.slane %v2323_v20, 5 }
 0x1fd   : > { %v2166_v25 = vpop.f32.mrb[24].mxu1 }
 0x1fe   : > { %v2487_v27 = vsel %vm2353_vm6, %v2486_v24, %v2485_v23  ;;  %v2325_v12 = vsub.f32 %v3423_v26, %v2166_v25  ;;  %v2908_v28 = vpop.f32.mrb[25].mxu1  ;;  %v2336_v26 = vld [vmem:[%s3512_s5] sm:$0xff] }
 0x1ff   : > { %v2489_v29 = vsel %vm2356_vm7, %v2488_v14, %v2487_v27 }
 0x200   : > { %v2490_v30 = vrot.slane %v2325_v12, 3 }
 0x201   : > { %v2316_v33 = vpop.f32.mrb[26].mxu1 }
 0x202   : > { %v2327_v34 = vsub.f32 %v3426_v31, %v2316_v33  ;;  %v2918_v21 = vpop.f32.mrb[27].mxu1  ;;  %v2491_v35 = vsel %vm2359_vm8, %v2490_v30, %v2489_v29 }
 0x203   : > { %v2493_v36 = vsel %vm2362_vm9, %v2492_v32, %v2491_v35 }
 0x204   : > { %v2494_v37 = vrot.slane %v2327_v34, 1 }
 0x206   : > { %v2495_v38 = vsel %vm2365_vm10, %v2494_v37, %v2493_v36 }
 0x207   : > { %2497 = vxpose.xlu0.b32.start.end [1/1] (short) (narrow) %v2495_v38, 8 }
 0x277   : > { %v2384_v39 = vpop.trf.xlu0 }
 0x278   : > { %2922 = vmatmul.mubr.msk.f32.vlgmr.msra.gmra.mrb[22].mxu0 %vm2400_vm11, %v2384_v39 }
 0x279   : > { %2925 = vmatpush3.msra.mxu0 %v2336_v26  ;;  %2926 = vmatprep.mubr.msk.f32.mxu0 %vm3038_vm2, %v3037_v3 }
 0x287   : > { %v2513_v31 = vpop.trf.xlu0 }
 0x288   : > { %2927 = vmatmul.mubr.msk.f32.vlgmr.msra.gmra.mrb[22].mxu0 %vm2400_vm11, %v2513_v31 }
 0x35b   : > { %v2598_v40 = vpop.f32.mrb[22].mxu0 }
 0x35c   : > { %2602 = vst [vmem:[%s269_s20] sm:$0xf] %v2598_v40  ;;  %v2928_v3 = vpop.f32.mrb[23].mxu0 }
 0x35d   : > { %2986 = shalt.err (!%p2983_p3)
}
 0x35e   : > { %s2987_s16 = scalar_lea.hbm %s3467_s8, 64  ;;  %s2991_s19 = scalar_lea.hbm %s3514_s7, 128 }
 0x35f   : > { %p2988_p4 = scmp.ne.s32.totalorder %s3467_s8, %s2987_s16  ;;  %p2992_p9 = scmp.lt.u32.totalorder %s3467_s8, %s3514_s7 }
 0x360   : > { %p2993_p10 = scmp.lt.u32.totalorder %s2991_s19, %s2987_s16  ;;  %p2995_p12 = scmp.lt.u32.totalorder %s2987_s16, %s3467_s8 }
 0x361   : > { %p2989_p7 = pnand %p2988_p4, %p3119_p5 }
 0x362   : > { %p2994_p11 = por %p2993_p10, %p2992_p9 }
 0x363   : > { %p2990_p8 = pneg %p2989_p7 }
 0x364   : > { %p2996_p13 = por %p2995_p12, %p2994_p11 }
 0x366   : > { %p2997_p0 = pnand %p2996_p13, %p2990_p8 }
 0x368   : > { %3000 = shalt.err (!%p2997_p0)
}
 0x369   : > { %2931 = dma.vmem_to_hbm [thread:$0]  (%p3119_p5), %s3462_s21, 64, %s3467_s8, %s2604_s9  }
 0x36a PF: > { %p2937_p1 = scmp.ge.s32.totalorder %s3035_s27, 2  ;;  %s2629_s23 = sand.u32 1, %s3023_s24  }
 0x36b   : > { %s2630_s29 = scalar_lea.sflag [#allocation3], %s2629_s23 }
 0x36c   : > { %p2934_p2 = pnand %p2937_p1, %p3123_p6 }
 0x36e   : > { %3018 = dma.done.wait (!%p2934_p2), %s2630_s29, 64  }
 0x36f   : > { %3020 = vsyncadd (!%p2934_p2), %s2630_s29, 4294967232  ;;  %p17_p3 = scmp.ge.s32.totalorder %s3106_s30, 4   ;;  %s3517_s24 = smov %s3027_s25 }
 0x370   : > { %s3518_s25 = smov %s3031_s26  ;;  %s3519_s26 = smov %s3117_s10 }
 0x371   : > { %s3520_s27 = smov %s3106_s30  ;;  %19 = sbr.rel (!%p17_p3) target bundleno = 3 (0x3), region = 83 }
 0x378   :  { %2635 = vsyncpa [#allocation3], 1 }
 0x379   :  { %2637 = vsyncpa [#allocation3 + $0x1], 1 }

</bundles_post_ra>
